<compile_context>
chip_gen: v7x
topology: tpu7x:2x2x1
jax: 0.10.0
libtpu: 0.0.40
codegen_flags: <defaults>
</compile_context>

<pallas_src>
import functools
from typing import NamedTuple

import numpy as np

import jax
import jax.numpy as jnp
from jax.experimental import pallas as pl
from jax.experimental.pallas import tpu as pltpu


# ----------------------------------------------------------------------------
# Kernels
# ----------------------------------------------------------------------------
def _linear_kernel_full_k(x_ref, w_ref, b_ref, o_ref):
    """One (tm, tn) output tile; the whole K reduction lives in one block."""
    x = x_ref[...]
    w = w_ref[...]
    if x.dtype != w.dtype:          # trace-time branch: in-kernel bf16 cast
        x = x.astype(w.dtype)
    acc = jnp.dot(x, w, preferred_element_type=jnp.float32)
    o_ref[...] = (acc + b_ref[...]).astype(o_ref.dtype)


def _linear_kernel_k_tiled(x_ref, w_ref, b_ref, o_ref, acc_ref):
    """One (tm, tn) output tile, reduced over the (last) K grid axis."""
    k = pl.program_id(2)

    @pl.when(k == 0)
    def _init():
        # Accumulator starts as the broadcast bias -> bias added exactly once
        # and the finalize path is a pure store.
        acc_ref[...] = jnp.zeros_like(acc_ref) + b_ref[...]

    x = x_ref[...]
    w = w_ref[...]
    if x.dtype != w.dtype:          # trace-time branch: in-kernel bf16 cast
        x = x.astype(w.dtype)
    acc_ref[...] += jnp.dot(x, w, preferred_element_type=jnp.float32)

    @pl.when(k == pl.num_programs(2) - 1)
    def _finalize():
        o_ref[...] = acc_ref[...].astype(o_ref.dtype)


# ----------------------------------------------------------------------------
# Hardware / tiling helpers
# ----------------------------------------------------------------------------
def _round_up(v, m):
    return ((v + m - 1) // m) * m


@functools.lru_cache(maxsize=None)
def _hw_caps():
    """Per-generation plan: (vmem_budget_bytes, m_tile_cap, is_v7x)."""
    try:
        kind = jax.devices()[0].device_kind.lower()
    except Exception:
        kind = ""
    is_v7 = "v7" in kind

    vmem_cap = None
    try:
        vmem_cap = int(pltpu.get_tpu_info().vmem_capacity_bytes)
    except Exception:
        vmem_cap = None
    if not vmem_cap or vmem_cap <= 0:
        vmem_cap = (64 if is_v7 else 128) * 1024 * 1024

    budget = (vmem_cap * 3) // 4          # headroom for compiler scratch
    # Bigger M tiles cut weight re-streaming (HBM bound on v5e/v6e); v7x has
    # only 64 MiB VMEM per TensorCore, so keep the cap lower there.
    m_cap = 512 if is_v7 else 1024
    return budget, m_cap, is_v7


# Preference order for lane-dim tiles: 256-aligned first (v6e/v7x MXU is
# 2x256x256; v5e only needs 128 alignment and is fine with any of these).
_LANE_TILE_PREF = (512, 256, 384, 128)


def _pick_lane_tile(dim_pad):
    """dim_pad is a multiple of 128; return a dividing tile <= 512."""
    for cand in _LANE_TILE_PREF:
        if cand <= dim_pad and dim_pad % cand == 0:
            return cand
    return 128


def _pick_m_tiling(batch, sub, cap):
    """Return (tm, m_pad): tm divides m_pad, tm % sub == 0, minimal padding."""
    m0 = _round_up(max(batch, 1), sub)
    if m0 <= cap:
        return m0, m0                       # single M tile, no extra padding
    # Largest divisor of m0 that is a multiple of `sub` and <= cap.
    best = sub
    d = sub
    while d <= cap:
        if m0 % d == 0:
            best = d
        d += sub
    if best * 2 >= cap:                     # good enough, zero extra padding
        return best, m0
    # Divisor tiling would create far too many M tiles (e.g. prime-ish batch);
    # pad M up to a large tile instead (bounded waste, far fewer weight reads).
    return cap, _round_up(m0, cap)


def _ensure_two_parallel_tiles(tm, tn, m_pad, n_pad, sub, is_v7):
    """On v7x (2 TensorCores) make sure the parallel grid has >= 2 tiles."""
    if not is_v7:
        return tm, tn
    if (m_pad // tm) * (n_pad // tn) > 1:
        return tm, tn
    if tm >= 2 * sub and (tm // 2) % sub == 0 and m_pad % (tm // 2) == 0:
        return tm // 2, tn
    if tn >= 256 and (tn // 2) % 128 == 0 and n_pad % (tn // 2) == 0:
        return tm, tn // 2
    return tm, tn


def _full_k_need(tm, k_pad, tn, x_elt, w_elt, out_elt):
    return (2 * tm * k_pad * x_elt      # x blocks (double buffered)
            + 2 * k_pad * tn * w_elt    # weight blocks
            + 2 * tn * 4                # bias blocks
            + 2 * tm * tn * out_elt)    # output blocks


def _k_tiled_need(tm, tk, tn, x_elt, w_elt, out_elt):
    return (2 * tm * tk * x_elt
            + 2 * tk * tn * w_elt
            + 2 * tn * 4
            + 2 * tm * tn * out_elt
            + tm * tn * 4)              # f32 accumulator scratch


# ----------------------------------------------------------------------------
# Parameter preparation (ONE-TIME, not on the per-forward hot path)
# ----------------------------------------------------------------------------
class PreparedLinear(NamedTuple):
    w_t: jax.Array   # (K_pad, N_pad): pre-transposed weight, padded to 128s
    b2d: jax.Array   # (1, N_pad): padded f32 bias
    d_in: int
    d_out: int


def prepare_linear_params(weight, bias, *, use_bf16_weights=False):
    """weight: (D_out, D_in) PyTorch layout; bias: (D_out,).

    Transposes and pads (to multiples of 128 only) once, so the hot path never
    re-transposes or over-pads.  bf16 weights halve the dominant HBM stream on
    every generation (v5e/v6e/v7x MXUs are natively bf16)."""
    d_out, d_in = weight.shape
    k_pad = _round_up(d_in, 128)
    n_pad = _round_up(d_out, 128)

    w_dtype = jnp.bfloat16 if use_bf16_weights else weight.dtype
    w_t = weight.T.astype(w_dtype)
    if (k_pad, n_pad) != (d_in, d_out):
        w_t = jnp.pad(w_t, ((0, k_pad - d_in), (0, n_pad - d_out)))

    b2d = bias.astype(jnp.float32).reshape(1, d_out)
    if n_pad != d_out:
        b2d = jnp.pad(b2d, ((0, 0), (0, n_pad - d_out)))

    return PreparedLinear(w_t=w_t, b2d=b2d, d_in=d_in, d_out=d_out)


# ----------------------------------------------------------------------------
# Forward
# ----------------------------------------------------------------------------
def linear_forward(x, params: PreparedLinear, *, out_dtype=jnp.float32,
                   _max_tk=None):
    """x: (B, D_in).  Returns (B, D_out) in `out_dtype` (default f32)."""
    batch, d_in = x.shape
    assert d_in == params.d_in, (d_in, params.d_in)

    budget, m_cap, is_v7 = _hw_caps()
    k_pad, n_pad = params.w_t.shape

    x_elt = np.dtype(x.dtype).itemsize
    w_elt = np.dtype(params.w_t.dtype).itemsize
    out_elt = np.dtype(out_dtype).itemsize

    sub = 8                                   # x stays f32 in HBM
    tm, m_pad = _pick_m_tiling(batch, sub, m_cap)
    tn = _pick_lane_tile(n_pad)
    tm, tn = _ensure_two_parallel_tiles(tm, tn, m_pad, n_pad, sub, is_v7)

    # Pad activations only when the shape is not already tile-aligned (avoids
    # an extra HBM pass on the common aligned case).
    if (m_pad, k_pad) != (batch, d_in):
        x_in = jnp.pad(x, ((0, m_pad - batch), (0, k_pad - d_in)))
    else:
        x_in = x

    full_k = (_max_tk is None and
              _full_k_need(tm, k_pad, tn, x_elt, w_elt, out_elt) <= budget)

    if full_k:
        grid = (m_pad // tm, n_pad // tn)
        need = _full_k_need(tm, k_pad, tn, x_elt, w_elt, out_elt)
        in_specs = [
            pl.BlockSpec((tm, k_pad), lambda i, j: (i, 0)),   # x
            pl.BlockSpec((k_pad, tn), lambda i, j: (0, j)),   # w (pre-T)
            pl.BlockSpec((1, tn),     lambda i, j: (0, j)),   # bias
        ]
        out_spec = pl.BlockSpec((tm, tn), lambda i, j: (i, j))
        scratch = []
        kernel = _linear_kernel_full_k
        dims = ("parallel", "parallel")
    else:
        tk = _pick_lane_tile(k_pad)
        if _max_tk is not None:
            tk = min(tk, _max_tk)
            assert k_pad % tk == 0
        grid = (m_pad // tm, n_pad // tn, k_pad // tk)
        need = _k_tiled_need(tm, tk, tn, x_elt, w_elt, out_elt)
        in_specs = [
            pl.BlockSpec((tm, tk), lambda i, j, k: (i, k)),   # x
            pl.BlockSpec((tk, tn), lambda i, j, k: (k, j)),   # w (pre-T)
            pl.BlockSpec((1, tn),  lambda i, j, k: (0, j)),   # bias
        ]
        out_spec = pl.BlockSpec((tm, tn), lambda i, j, k: (i, j))
        scratch = [pltpu.VMEM((tm, tn), jnp.float32)]
        kernel = _linear_kernel_k_tiled
        dims = ("parallel", "parallel", "arbitrary")

    # VMEM limit: small fixed headroom on top of the actual buffer need,
    # clipped to the per-generation budget, never below the need itself.
    vmem_limit = int(min(budget, max(need + (2 << 20), 32 << 20)))
    vmem_limit = max(vmem_limit, need)

    out_p = pl.pallas_call(
        kernel,
        out_shape=jax.ShapeDtypeStruct((m_pad, n_pad), out_dtype),
        grid_spec=pltpu.PrefetchScalarGridSpec(
            num_scalar_prefetch=0,
            grid=grid,
            in_specs=in_specs,
            out_specs=out_spec,
            scratch_shapes=scratch,
        ),
        compiler_params=pltpu.CompilerParams(
            dimension_semantics=dims,
            vmem_limit_bytes=vmem_limit,
        ),
    )(x_in, params.w_t, params.b2d)

    if (m_pad, n_pad) != (batch, params.d_out):
        out_p = out_p[:batch, :params.d_out]
    return out_p


# ----------------------------------------------------------------------------
# Demo / correctness check
# ----------------------------------------------------------------------------
def _init_linear_params(key, input_dim, output_dim):
    """PyTorch nn.Linear default init: U(-1/sqrt(in), +1/sqrt(in))."""
    kw, kb = jax.random.split(key)
    bound = 1.0 / (input_dim ** 0.5)
    weight = jax.random.uniform(kw, (output_dim, input_dim),
                                minval=-bound, maxval=bound, dtype=jnp.float32)
    bias = jax.random.uniform(kb, (output_dim,),
                              minval=-bound, maxval=bound, dtype=jnp.float32)
    return weight, bias


if __name__ == "__main__":
    key = jax.random.PRNGKey(0)
    k0, k1, k2, k3, k4, k5 = jax.random.split(key, 6)

    # 1) Small shape typical of the module (full-K fused path, padded lanes).
    B, Din, Dout = 2, 32, 16
    w1, b1 = _init_linear_params(k0, Din, Dout)
    x1 = jax.random.normal(k1, (B, Din), dtype=jnp.float32)
    p1 = prepare_linear_params(w1, b1)
    y1 = linear_forward(x1, p1)
    jax.block_until_ready(y1)
    ref1 = x1 @ w1.T + b1
    assert y1.shape == (B, Dout)
    assert jnp.allclose(y1, ref1, atol=2e-3, rtol=2e-3)

    # 2) Larger, non-aligned shape (full-K fused path; K/N padded to 128 only).
    B2, Din2, Dout2 = 256, 384, 200
    w2, b2 = _init_linear_params(k2, Din2, Dout2)
    x2 = jax.random.normal(k3, (B2, Din2), dtype=jnp.float32)
    p2 = prepare_linear_params(w2, b2)
    y2 = linear_forward(x2, p2)
    jax.block_until_ready(y2)
    ref2 = x2 @ w2.T + b2
    assert y2.shape == (B2, Dout2)
    assert jnp.allclose(y2, ref2, atol=2e-3, rtol=2e-3)

    # 3) Same problem with bf16 weights (activations cast inside the kernel).
    p2_bf16 = prepare_linear_params(w2, b2, use_bf16_weights=True)
    y2_bf16 = linear_forward(x2, p2_bf16)
    jax.block_until_ready(y2_bf16)
    assert jnp.allclose(y2_bf16, ref2, atol=5e-2, rtol=5e-2)

    # 4) Force the K-tiled accumulator path (internal test hook, tk=128 -> 3 K steps).
    y2_kt = linear_forward(x2, p2, _max_tk=128)
    jax.block_until_ready(y2_kt)
    assert jnp.allclose(y2_kt, ref2, atol=2e-3, rtol=2e-3)

    # 5) Fully tile-aligned shape: no wrapper-side pad and no output slice.
    B3, Din3, Dout3 = 128, 256, 128
    w3, b3 = _init_linear_params(k4, Din3, Dout3)
    x3 = jax.random.normal(k5, (B3, Din3), dtype=jnp.float32)
    p3 = prepare_linear_params(w3, b3)
    y3 = linear_forward(x3, p3)
    jax.block_until_ready(y3)
    ref3 = x3 @ w3.T + b3
    assert y3.shape == (B3, Dout3)
    assert jnp.allclose(y3, ref3, atol=2e-3, rtol=2e-3)

    print("KERNEL_OK")
</pallas_src>

<mosaic_0001>
module attributes {stable_mosaic.version = 11 : i64} {
  func.func @_linear_kernel_full_k(%arg0: i32, %arg1: i32, %arg2: memref<8x128xf32, #tpu.memory_space<vmem>>, %arg3: memref<128x128xf32, #tpu.memory_space<vmem>>, %arg4: memref<1x128xf32, #tpu.memory_space<vmem>>, %arg5: memref<8x128xf32, #tpu.memory_space<vmem>>) attributes {dimension_semantics = [#tpu.dimension_semantics<parallel>, #tpu.dimension_semantics<parallel>], iteration_bounds = array<i64: 1, 1>, scalar_prefetch = 0 : i64, scratch_operands = 0 : i64, tpu.core_type = #tpu.core_type<tc>, window_params = [{transform_indices = @transform_0, window_bounds = array<i64: 8, 128>}, {transform_indices = @transform_1, window_bounds = array<i64: 128, 128>}, {transform_indices = @transform_2, window_bounds = array<i64: 1, 128>}, {transform_indices = @transform_3, window_bounds = array<i64: 8, 128>}]} {
    %c0 = arith.constant 0 : index
    %c0_0 = arith.constant 0 : index
    %0 = vector.load %arg2[%c0, %c0_0] : memref<8x128xf32, #tpu.memory_space<vmem>>, vector<8x128xf32>
    %c0_1 = arith.constant 0 : index
    %c0_2 = arith.constant 0 : index
    %1 = vector.load %arg3[%c0_1, %c0_2] : memref<128x128xf32, #tpu.memory_space<vmem>>, vector<128x128xf32>
    %cst = arith.constant dense<0.000000e+00> : vector<8x128xf32>
    %2 = tpu.matmul %0, %1, %cst {dimension_numbers = #tpu.dot_dimension_numbers<[1], [0], [0], [1], [0, 0, 1, 1], [], []>} : vector<8x128xf32>, vector<128x128xf32>, vector<8x128xf32> -> vector<8x128xf32>
    %c0_3 = arith.constant 0 : index
    %c0_4 = arith.constant 0 : index
    %3 = vector.load %arg4[%c0_3, %c0_4] : memref<1x128xf32, #tpu.memory_space<vmem>>, vector<1x128xf32>
    %4 = vector.broadcast %3 : vector<1x128xf32> to vector<8x128xf32>
    %5 = arith.addf %2, %4 : vector<8x128xf32>
    %c0_5 = arith.constant 0 : index
    %c0_6 = arith.constant 0 : index
    %6 = vector.load %arg5[%c0_5, %c0_6] : memref<8x128xf32, #tpu.memory_space<vmem>>, vector<8x128xf32>
    tpu.vector_store %arg5[%c0_5, %c0_6], %5 {strides = array<i32>} : memref<8x128xf32, #tpu.memory_space<vmem>>, vector<8x128xf32>,
    return
  }
  func.func @transform_0(%arg0: i32, %arg1: i32) -> (i32, i32) {
    %c0_i32 = arith.constant 0 : i32
    %c0_i32_0 = arith.constant 0 : i32
    return %arg0, %c0_i32 : i32, i32
  }
  func.func @transform_1(%arg0: i32, %arg1: i32) -> (i32, i32) {
    %c0_i32 = arith.constant 0 : i32
    %c0_i32_0 = arith.constant 0 : i32
    return %c0_i32, %arg1 : i32, i32
  }
  func.func @transform_2(%arg0: i32, %arg1: i32) -> (i32, i32) {
    %c0_i32 = arith.constant 0 : i32
    %c0_i32_0 = arith.constant 0 : i32
    return %c0_i32, %arg1 : i32, i32
  }
  func.func @transform_3(%arg0: i32, %arg1: i32) -> (i32, i32) {
    %c0_i32 = arith.constant 0 : i32
    return %arg0, %arg1 : i32, i32
  }
}

</mosaic_0001>

<bundles_post_ra>
// kernel: tpu_custom_call.1
= control target key start
LH: loop header
LB: loop body
LE: loop exit
PB: predicated region body
PF: predicated region fallthrough
CT: control target
= control target key end

     0   :  { %8 = vsyncpa [#allocation3], 0  ;;  %s383_s0 = inlined_call_operand.hbm [shape: f32[8,128], index: 0, kind: input, shape index: {}]   ;;  %s384_s1 = inlined_call_operand.hbm [shape: f32[128,128], index: 1, kind: input, shape index: {}]   ;;  %s385_s2 = inlined_call_operand.vmem [shape: f32[1,128], index: 2, kind: input, shape index: {}]   ;;  %s386_s3 = inlined_call_operand.hbm [shape: f32[8,128], index: 3, kind: output, shape index: {}]  }
   0x1   :  { %9 = vsyncpa [#allocation6], 0 }
   0x2   :  { %10 = vsyncpa [#allocation4], 0  ;;  %s309_s12 = smov [#allocation2]   ;;  %s310_s14 = smov [#allocation5]  }
   0x3   :  { %s17_s13 = sshll.u32 %s309_s12, 4  ;;  %s26_s15 = sshll.u32 %s310_s14, 4  ;;  %s18_s13 = int_to_ptr.vmem [resolvable:$true] %s17_s13  ;;  %s337_s15 = int_to_ptr.vmem [resolvable:$true] %s26_s15 }
   0x4   :  { %s237_s18 = scalar_lea.hbm %s383_s0, 128 }
   0x5   :  { %p238_p0 = scmp.ne.s32.totalorder %s383_s0, %s237_s18  ;;  %p241_p1 = scmp.lt.u32.totalorder %s237_s18, %s383_s0 }
   0x7   :  { %p243_p2 = pnand %p241_p1, %p238_p0 }
   0x9   :  { %246 = shalt.err (!%p243_p2)
}
   0xa   :  { %s247_s23 = scalar_lea.vmem %s18_s13, 128  ;;  %p252_p4 = scmp.lt.s32.totalorder %s18_s13, %s18_s13 }
   0xb   :  { %p248_p3 = scmp.ne.s32.totalorder %s18_s13, %s247_s23  ;;  %p253_p5 = scmp.lt.s32.totalorder %s247_s23, %s247_s23 }
   0xd   :  { %p254_p6 = por %p253_p5, %p252_p4 }
   0xf   :  { %p255_p7 = pnand %p254_p6, %p248_p3 }
  0x11   :  { %258 = shalt.err (!%p255_p7)
}
  0x12   :  { %20 = dma.hbm_to_vmem [thread:$0]  %s383_s0, 128, %s18_s13, [#allocation3]  }
  0x13   :  { %s259_s28 = scalar_lea.hbm %s384_s1, 2048 }
  0x14   :  { %p260_p8 = scmp.ne.s32.totalorder %s384_s1, %s259_s28  ;;  %p263_p9 = scmp.lt.u32.totalorder %s259_s28, %s384_s1 }
  0x16   :  { %p265_p10 = pnand %p263_p9, %p260_p8 }
  0x18   :  { %268 = shalt.err (!%p265_p10)
}
  0x19   :  { %s269_s6 = scalar_lea.vmem %s337_s15, 2048  ;;  %p274_p12 = scmp.lt.s32.totalorder %s337_s15, %s337_s15 }
  0x1a   :  { %p270_p11 = scmp.ne.s32.totalorder %s337_s15, %s269_s6  ;;  %p275_p13 = scmp.lt.s32.totalorder %s269_s6, %s269_s6 }
  0x1c   :  { %p276_p0 = por %p275_p13, %p274_p12 }
  0x1e   :  { %p277_p1 = pnand %p276_p0, %p270_p11 }
  0x20   :  { %280 = shalt.err (!%p277_p1)
}
  0x21   :  { %s311_s0 = smov 128   ;;  %s312_s7 = smov 8  }
  0x22   :  { %32 = dma.hbm_to_vmem [thread:$0]  %s384_s1, 2048, %s337_s15, [#allocation6], %s311_s0, %s311_s0, %s312_s7  }
  0x23   :  { %303 = dma.done.wait [#allocation3], 128  }
  0x24   :  { %304 = vsyncadd [#allocation3], 4294967168 }
  0x25   :  { %305 = dma.done.wait [#allocation6], 2048  }
  0x26   :  { %306 = vsyncadd [#allocation6], 4294965248  ;;  %v313_v0 = vmov 0.0|0.0   ;;  %vm314_vm0 = vmmov 0   ;;  %v315_v1 = vmov 0.0   ;;  %v42_v2 = vld [vmem:[#allocation5] sm:$0xff] }
  0x27   :  { %205 = vmatprep.subr.bf16.mxu0 %v313_v0  ;;  %202 = vmatprep.mubr.msk.f32.mxu0 %vm314_vm0, %v315_v1  ;;  %v43_v3 = vld [vmem:[#allocation5 + $0x8] sm:$0xff]  ;;  %v44_v4 = vld [vmem:[#allocation5 + $0x10] sm:$0xff]  ;;  %v45_v6 = vld [vmem:[#allocation5 + $0x18] sm:$0xff]  ;;  %s316_s11 = smov [#allocation7]  }
  0x28   :  { %v206_v5 = vpack.c.bf16 %v43_v3, %v42_v2  ;;  %v209_v7 = vpack.c.bf16 %v45_v6, %v44_v4  ;;  %v46_v8 = vld [vmem:[#allocation5 + $0x20] sm:$0xff]  ;;  %v47_v9 = vld [vmem:[#allocation5 + $0x28] sm:$0xff]  ;;  %v48_v11 = vld [vmem:[#allocation5 + $0x30] sm:$0xff]  ;;  %s142_s12 = sshll.u32 %s316_s11, 4  ;;  %s143_s12 = int_to_ptr.vmem [resolvable:$true] %s142_s12 }
  0x29   :  { %v212_v10 = vpack.c.bf16 %v47_v9, %v46_v8  ;;  %v49_v12 = vld [vmem:[#allocation5 + $0x38] sm:$0xff]  ;;  %v50_v14 = vld [vmem:[#allocation5 + $0x40] sm:$0xff]  ;;  %v51_v15 = vld [vmem:[#allocation5 + $0x48] sm:$0xff]  ;;  %s281_s13 = scalar_lea.vmem %s143_s12, 128  ;;  %p286_p3 = scmp.lt.s32.totalorder %s143_s12, %s143_s12 }
  0x2a   :  { %207 = vmatpush3.bf16.msra.mxu0 %v206_v5  ;;  %v215_v13 = vpack.c.bf16 %v49_v12, %v48_v11  ;;  %v218_v16 = vpack.c.bf16 %v51_v15, %v50_v14  ;;  %v52_v17 = vld [vmem:[#allocation5 + $0x50] sm:$0xff]  ;;  %v53_v18 = vld [vmem:[#allocation5 + $0x58] sm:$0xff]  ;;  %v54_v20 = vld [vmem:[#allocation5 + $0x60] sm:$0xff]  ;;  %p282_p2 = scmp.ne.s32.totalorder %s143_s12, %s281_s13  ;;  %p287_p4 = scmp.lt.s32.totalorder %s281_s13, %s281_s13 }
  0x2b   :  { %208 = vmatprep.subr.bf16.mxu0 %v313_v0  ;;  %v221_v19 = vpack.c.bf16 %v53_v18, %v52_v17  ;;  %v55_v21 = vld [vmem:[#allocation5 + $0x68] sm:$0xff]  ;;  %v56_v23 = vld [vmem:[#allocation5 + $0x70] sm:$0xff]  ;;  %v57_v24 = vld [vmem:[#allocation5 + $0x78] sm:$0xff] }
  0x2c   :  { %v224_v22 = vpack.c.bf16 %v55_v21, %v54_v20  ;;  %v227_v25 = vpack.c.bf16 %v57_v24, %v56_v23  ;;  %v41_v26 = vld [vmem:[#allocation2] sm:$0xff]  ;;  %p288_p5 = por %p287_p4, %p286_p3 }
  0x2d   :  { %v152_v27 = vld [vmem:[%s385_s2] ss:$0 sm:$0xff] }
  0x2e   :  { %210 = vmatpush3.bf16.msra.mxu0 %v209_v7  ;;  %p289_p6 = pnand %p288_p5, %p282_p2 }
  0x2f   :  { %211 = vmatprep.subr.bf16.mxu0 %v313_v0 }
  0x32   :  { %213 = vmatpush3.bf16.msra.mxu0 %v212_v10 }
  0x33   :  { %214 = vmatprep.subr.bf16.mxu0 %v313_v0 }
  0x36   :  { %216 = vmatpush3.bf16.msra.mxu0 %v215_v13 }
  0x37   :  { %217 = vmatprep.subr.bf16.mxu0 %v313_v0 }
  0x3a   :  { %219 = vmatpush3.bf16.msra.mxu0 %v218_v16 }
  0x3b   :  { %220 = vmatprep.subr.bf16.mxu0 %v313_v0 }
  0x3e   :  { %222 = vmatpush3.bf16.msra.mxu0 %v221_v19 }
  0x3f   :  { %223 = vmatprep.subr.bf16.mxu0 %v313_v0 }
  0x42   :  { %225 = vmatpush3.bf16.msra.mxu0 %v224_v22 }
  0x43   :  { %226 = vmatprep.subr.bf16.mxu0 %v313_v0 }
  0x46   :  { %228 = vmatpush3.bf16.msra.mxu0 %v227_v25 }
  0x49   :  { %203 = vmatmul.mubr.f32.vlgmr.msra.gmra.mrb[0].mxu0 %v41_v26 }
 0x11c   :  { %v131_v28 = vpop.f32.mrb[0].mxu0 }
 0x11d   :  { %v132_v29 = vadd.f32 %v152_v27, %v131_v28  ;;  %v204_v30 = vpop.f32.mrb[1].mxu0 }
 0x11f   :  { %135 = vst [vmem:[#allocation7] sm:$0xff] %v132_v29 }
 0x120   :  { %292 = shalt.err (!%p289_p6)
}
 0x121   :  { %s293_s16 = scalar_lea.hbm %s386_s3, 128 }
 0x122   :  { %p294_p7 = scmp.ne.s32.totalorder %s386_s3, %s293_s16  ;;  %p297_p8 = scmp.lt.u32.totalorder %s293_s16, %s386_s3 }
 0x124   :  { %p299_p9 = pnand %p297_p8, %p294_p7 }
 0x126   :  { %302 = shalt.err (!%p299_p9)
}
 0x127   :  { %145 = dma.vmem_to_hbm [thread:$0]  %s143_s12, 128, %s386_s3, [#allocation4]  }
 0x128   :  { %307 = dma.done.wait [#allocation4], 128  }
 0x129   :  { %308 = vsyncadd [#allocation4], 4294967168 }
 0x12a   :  { %149 = vsyncpa [#allocation3], 1 }
 0x12b   :  { %150 = vsyncpa [#allocation6], 1 }
 0x12c   :  { %151 = vsyncpa [#allocation4], 1 }

</bundles_post_ra>
